<compile_context>
chip_gen: v6e
topology: v6e:2x2x1
jax: 0.10.0
libtpu: 0.0.40
codegen_flags: <defaults>
</compile_context>

<pallas_src>
import math
import jax
import jax.numpy as jnp
from jax.experimental import pallas as pl
from jax.experimental.pallas import tpu as pltpu


def _round_up(x, m):
    return ((x + m - 1) // m) * m


def _cdiv(a, b):
    return (a + b - 1) // b


def value_mlp_kernel(x_ref, w0_ref, b0_ref, w1_ref, b1_ref, w2_ref, b2_ref, o_ref):
    """Full MLP hot path for one batch tile: two ReLU linears + narrow head."""
    cdt = w0_ref.dtype  # compute dtype for MXU operands (bf16 or f32)

    # fc0 + ReLU. Input cast happens here (cheap VPU op) instead of a host-side pass.
    x = x_ref[...].astype(cdt)
    h = jnp.dot(x, w0_ref[...], preferred_element_type=jnp.float32) + b0_ref[...]
    h = jnp.maximum(h, 0.0).astype(cdt)          # carry hidden activations in compute dtype

    # fc1 + ReLU
    h = jnp.dot(h, w1_ref[...], preferred_element_type=jnp.float32) + b1_ref[...]
    h = jnp.maximum(h, 0.0).astype(cdt)

    # last_fc: true output width (tiny); masked store is cheaper than 64x HBM writeback.
    q = jnp.dot(h, w2_ref[...], preferred_element_type=jnp.float32) + b2_ref[...]
    o_ref[...] = q.astype(o_ref.dtype)


def prepare_value_params(params, compute_dtype=jnp.bfloat16):
    """One-time parameter prep (hoisted out of the per-call graph).
    Weights go to the MXU compute dtype; biases stay f32 (f32 elementwise path)."""
    w0, b0, w1, b1, w2, b2 = params
    return (
        w0.astype(compute_dtype), b0.astype(jnp.float32),
        w1.astype(compute_dtype), b1.astype(jnp.float32),
        w2.astype(compute_dtype), b2.astype(jnp.float32),
    )


def _pick_tile_b(batch, tile_b):
    if tile_b is not None:
        return max(8, _round_up(tile_b, 8))
    b8 = _round_up(batch, 8)
    if b8 < 16:
        return b8
    # >= 2 grid steps so dimension_semantics=("parallel",) can use both v7x TCs;
    # cap tile size (per-step footprint stays well under every gen's VMEM budget).
    max_tile = 2048
    num_steps = max(2, _cdiv(batch, max_tile))
    return _round_up(_cdiv(batch, num_steps), 8)


def value_forward(state, prepared_params, *, tile_b=None):
    """Pallas forward for Value: state [B, D] (f32) -> v [B, out_size] (f32)."""
    w0, b0, w1, b1, w2, b2 = prepared_params
    batch, state_dim = state.shape
    h0 = w0.shape[1]
    h1 = w1.shape[1]
    out_size = w2.shape[1]

    tile_b = _pick_tile_b(batch, tile_b)
    b_pad = _round_up(batch, tile_b)

    x = state
    if b_pad != batch:
        x = jnp.pad(x, ((0, b_pad - batch), (0, 0)))

    grid = (b_pad // tile_b,)

    def const_map(b):  # weights/biases: same block every grid step -> VMEM-resident
        return (0, 0)

    w_itemsize = jnp.dtype(w0.dtype).itemsize
    flops = 2 * b_pad * (state_dim * h0 + h0 * h1 + h1 * out_size)
    bytes_accessed = (
        b_pad * state_dim * 4                    # input activations (f32)
        + b_pad * out_size * 4                   # output (f32, true width)
        + (w0.size + w1.size + w2.size) * w_itemsize
        + (b0.size + b1.size + b2.size) * 4
    )

    out = pl.pallas_call(
        value_mlp_kernel,
        out_shape=jax.ShapeDtypeStruct((b_pad, out_size), jnp.float32),
        grid=grid,
        in_specs=[
            pl.BlockSpec((tile_b, state_dim), lambda b: (b, 0)),
            pl.BlockSpec(w0.shape, const_map),
            pl.BlockSpec(b0.shape, const_map),
            pl.BlockSpec(w1.shape, const_map),
            pl.BlockSpec(b1.shape, const_map),
            pl.BlockSpec(w2.shape, const_map),
            pl.BlockSpec(b2.shape, const_map),
        ],
        out_specs=pl.BlockSpec((tile_b, out_size), lambda b: (b, 0)),
        compiler_params=pltpu.CompilerParams(
            dimension_semantics=("parallel",),
            vmem_limit_bytes=32 * 1024 * 1024,
        ),
        cost_estimate=pl.CostEstimate(
            flops=int(flops), transcendentals=0, bytes_accessed=int(bytes_accessed)),
    )(x, w0, b0, w1, b1, w2, b2)

    if b_pad != batch:
        out = out[:batch]
    return out


def init_value_params(key, state_dim, out_size, hidden_sizes=(32, 32)):
    """Deterministic init mirroring Value.reset_parameters():
       - hidden layers: fanin_init weights (U[-1/sqrt(fanin), 1/sqrt(fanin)]), bias = 0.1
       - last layer:    U[-0.003, 0.003] for both weight and bias
       Weights returned as [in, out]."""
    in_size = state_dim
    params = []
    sizes = list(hidden_sizes)
    keys = jax.random.split(key, len(sizes) + 2)

    for i, next_size in enumerate(sizes):
        bound = 1.0 / math.sqrt(in_size)
        w = jax.random.uniform(keys[i], (in_size, next_size),
                               minval=-bound, maxval=bound, dtype=jnp.float32)
        b = jnp.full((1, next_size), 0.1, dtype=jnp.float32)
        params += [w, b]
        in_size = next_size

    init_w1 = 0.003
    w_last = jax.random.uniform(keys[-2], (in_size, out_size),
                                minval=-init_w1, maxval=init_w1, dtype=jnp.float32)
    b_last = jax.random.uniform(keys[-1], (1, out_size),
                                minval=-init_w1, maxval=init_w1, dtype=jnp.float32)
    params += [w_last, b_last]
    return tuple(params)


def value_reference(state, params):
    """Pure-JAX f32 reference matching the PyTorch module's numerics."""
    w0, b0, w1, b1, w2, b2 = params
    h = jnp.maximum(jnp.dot(state, w0) + b0, 0.0)
    h = jnp.maximum(jnp.dot(h, w1) + b1, 0.0)
    return jnp.dot(h, w2) + b2


if __name__ == "__main__":
    # Small shapes consistent with Value(state_dim, out_size, hidden_sizes)
    batch, state_dim, out_size = 80, 12, 2
    hidden_sizes = (32, 32)

    key = jax.random.PRNGKey(0)
    k_state, k_params = jax.random.split(key)

    state = jax.random.normal(k_state, (batch, state_dim), dtype=jnp.float32)
    params = init_value_params(k_params, state_dim, out_size, hidden_sizes)
    v_ref = value_reference(state, params)

    # bf16 MXU operands, f32 accumulate/elementwise (default fast path).
    prepared_bf16 = prepare_value_params(params, compute_dtype=jnp.bfloat16)
    v_bf16 = jax.block_until_ready(value_forward(state, prepared_bf16))  # grid of 2 tiles
    assert v_bf16.shape == (batch, out_size)
    assert jnp.allclose(v_bf16, v_ref, atol=5e-3, rtol=5e-2), "bf16 path mismatch vs f32 reference"

    # f32 escape hatch: exact-PyTorch-numerics check; also exercise a non-default tiling.
    prepared_f32 = prepare_value_params(params, compute_dtype=jnp.float32)
    v_f32 = jax.block_until_ready(value_forward(state, prepared_f32, tile_b=16))  # grid of 5 tiles
    assert v_f32.shape == (batch, out_size)
    assert jnp.allclose(v_f32, v_ref, atol=1e-5, rtol=1e-5), "f32 path mismatch vs f32 reference"

    print("KERNEL_OK")
</pallas_src>

<mosaic_0001>
module attributes {stable_mosaic.version = 11 : i64} {
  func.func @value_mlp_kernel(%arg0: i32, %arg1: memref<40x12xf32, #tpu.memory_space<vmem>>, %arg2: memref<12x32xbf16, #tpu.memory_space<vmem>>, %arg3: memref<1x32xf32, #tpu.memory_space<vmem>>, %arg4: memref<32x32xbf16, #tpu.memory_space<vmem>>, %arg5: memref<1x32xf32, #tpu.memory_space<vmem>>, %arg6: memref<32x2xbf16, #tpu.memory_space<vmem>>, %arg7: memref<1x2xf32, #tpu.memory_space<vmem>>, %arg8: memref<40x2xf32, #tpu.memory_space<vmem>>) attributes {dimension_semantics = [#tpu.dimension_semantics<parallel>], iteration_bounds = array<i64: 2>, scalar_prefetch = 0 : i64, scratch_operands = 0 : i64, tpu.core_type = #tpu.core_type<tc>, window_params = [{transform_indices = @transform_0, window_bounds = array<i64: 40, 12>}, {pipeline_mode = #tpu.pipeline_mode<synchronous>, transform_indices = @transform_1, window_bounds = array<i64: 12, 32>}, {pipeline_mode = #tpu.pipeline_mode<synchronous>, transform_indices = @transform_2, window_bounds = array<i64: 1, 32>}, {pipeline_mode = #tpu.pipeline_mode<synchronous>, transform_indices = @transform_3, window_bounds = array<i64: 32, 32>}, {pipeline_mode = #tpu.pipeline_mode<synchronous>, transform_indices = @transform_4, window_bounds = array<i64: 1, 32>}, {pipeline_mode = #tpu.pipeline_mode<synchronous>, transform_indices = @transform_5, window_bounds = array<i64: 32, 2>}, {pipeline_mode = #tpu.pipeline_mode<synchronous>, transform_indices = @transform_6, window_bounds = array<i64: 1, 2>}, {transform_indices = @transform_7, window_bounds = array<i64: 40, 2>}]} {
    %c0 = arith.constant 0 : index
    %c0_0 = arith.constant 0 : index
    %0 = vector.load %arg1[%c0, %c0_0] : memref<40x12xf32, #tpu.memory_space<vmem>>, vector<40x12xf32>
    %1 = arith.truncf %0 : vector<40x12xf32> to vector<40x12xbf16>
    %c0_1 = arith.constant 0 : index
    %c0_2 = arith.constant 0 : index
    %2 = vector.load %arg2[%c0_1, %c0_2] : memref<12x32xbf16, #tpu.memory_space<vmem>>, vector<12x32xbf16>
    %cst = arith.constant dense<0.000000e+00> : vector<40x32xf32>
    %3 = tpu.matmul %1, %2, %cst {dimension_numbers = #tpu.dot_dimension_numbers<[1], [0], [0], [1], [0, 0, 1, 1], [], []>} : vector<40x12xbf16>, vector<12x32xbf16>, vector<40x32xf32> -> vector<40x32xf32>
    %c0_3 = arith.constant 0 : index
    %c0_4 = arith.constant 0 : index
    %4 = vector.load %arg3[%c0_3, %c0_4] : memref<1x32xf32, #tpu.memory_space<vmem>>, vector<1x32xf32>
    %5 = vector.broadcast %4 : vector<1x32xf32> to vector<40x32xf32>
    %6 = arith.addf %3, %5 : vector<40x32xf32>
    %cst_5 = arith.constant 0.000000e+00 : f32
    %7 = vector.broadcast %cst_5 : f32 to vector<40x32xf32>
    %8 = arith.maximumf %6, %7 : vector<40x32xf32>
    %9 = arith.truncf %8 : vector<40x32xf32> to vector<40x32xbf16>
    %c0_6 = arith.constant 0 : index
    %c0_7 = arith.constant 0 : index
    %10 = vector.load %arg4[%c0_6, %c0_7] : memref<32x32xbf16, #tpu.memory_space<vmem>>, vector<32x32xbf16>
    %cst_8 = arith.constant dense<0.000000e+00> : vector<40x32xf32>
    %11 = tpu.matmul %9, %10, %cst_8 {dimension_numbers = #tpu.dot_dimension_numbers<[1], [0], [0], [1], [0, 0, 1, 1], [], []>} : vector<40x32xbf16>, vector<32x32xbf16>, vector<40x32xf32> -> vector<40x32xf32>
    %c0_9 = arith.constant 0 : index
    %c0_10 = arith.constant 0 : index
    %12 = vector.load %arg5[%c0_9, %c0_10] : memref<1x32xf32, #tpu.memory_space<vmem>>, vector<1x32xf32>
    %13 = vector.broadcast %12 : vector<1x32xf32> to vector<40x32xf32>
    %14 = arith.addf %11, %13 : vector<40x32xf32>
    %cst_11 = arith.constant 0.000000e+00 : f32
    %15 = vector.broadcast %cst_11 : f32 to vector<40x32xf32>
    %16 = arith.maximumf %14, %15 : vector<40x32xf32>
    %17 = arith.truncf %16 : vector<40x32xf32> to vector<40x32xbf16>
    %c0_12 = arith.constant 0 : index
    %c0_13 = arith.constant 0 : index
    %18 = vector.load %arg6[%c0_12, %c0_13] : memref<32x2xbf16, #tpu.memory_space<vmem>>, vector<32x2xbf16>
    %cst_14 = arith.constant dense<0.000000e+00> : vector<40x2xf32>
    %19 = tpu.matmul %17, %18, %cst_14 {dimension_numbers = #tpu.dot_dimension_numbers<[1], [0], [0], [1], [0, 0, 1, 1], [], []>} : vector<40x32xbf16>, vector<32x2xbf16>, vector<40x2xf32> -> vector<40x2xf32>
    %c0_15 = arith.constant 0 : index
    %c0_16 = arith.constant 0 : index
    %20 = vector.load %arg7[%c0_15, %c0_16] : memref<1x2xf32, #tpu.memory_space<vmem>>, vector<1x2xf32>
    %21 = vector.broadcast %20 : vector<1x2xf32> to vector<40x2xf32>
    %22 = arith.addf %19, %21 : vector<40x2xf32>
    %c0_17 = arith.constant 0 : index
    %c0_18 = arith.constant 0 : index
    %23 = vector.load %arg8[%c0_17, %c0_18] : memref<40x2xf32, #tpu.memory_space<vmem>>, vector<40x2xf32>
    tpu.vector_store %arg8[%c0_17, %c0_18], %22 {strides = array<i32>} : memref<40x2xf32, #tpu.memory_space<vmem>>, vector<40x2xf32>,
    return
  }
  func.func @transform_0(%arg0: i32) -> (i32, i32) {
    %c0_i32 = arith.constant 0 : i32
    %c0_i32_0 = arith.constant 0 : i32
    return %arg0, %c0_i32 : i32, i32
  }
  func.func @transform_1(%arg0: i32) -> (i32, i32) {
    %c0_i32 = arith.constant 0 : i32
    %c0_i32_0 = arith.constant 0 : i32
    %c0_i32_1 = arith.constant 0 : i32
    return %c0_i32, %c0_i32_0 : i32, i32
  }
  func.func @transform_2(%arg0: i32) -> (i32, i32) {
    %c0_i32 = arith.constant 0 : i32
    %c0_i32_0 = arith.constant 0 : i32
    %c0_i32_1 = arith.constant 0 : i32
    return %c0_i32, %c0_i32_0 : i32, i32
  }
  func.func @transform_3(%arg0: i32) -> (i32, i32) {
    %c0_i32 = arith.constant 0 : i32
    %c0_i32_0 = arith.constant 0 : i32
    %c0_i32_1 = arith.constant 0 : i32
    return %c0_i32, %c0_i32_0 : i32, i32
  }
  func.func @transform_4(%arg0: i32) -> (i32, i32) {
    %c0_i32 = arith.constant 0 : i32
    %c0_i32_0 = arith.constant 0 : i32
    %c0_i32_1 = arith.constant 0 : i32
    return %c0_i32, %c0_i32_0 : i32, i32
  }
  func.func @transform_5(%arg0: i32) -> (i32, i32) {
    %c0_i32 = arith.constant 0 : i32
    %c0_i32_0 = arith.constant 0 : i32
    %c0_i32_1 = arith.constant 0 : i32
    return %c0_i32, %c0_i32_0 : i32, i32
  }
  func.func @transform_6(%arg0: i32) -> (i32, i32) {
    %c0_i32 = arith.constant 0 : i32
    %c0_i32_0 = arith.constant 0 : i32
    %c0_i32_1 = arith.constant 0 : i32
    return %c0_i32, %c0_i32_0 : i32, i32
  }
  func.func @transform_7(%arg0: i32) -> (i32, i32) {
    %c0_i32 = arith.constant 0 : i32
    %c0_i32_0 = arith.constant 0 : i32
    return %arg0, %c0_i32 : i32, i32
  }
}

</mosaic_0001>

<bundles_post_ra>
// kernel: tpu_custom_call.1
= control target key start
LH: loop header
LB: loop body
LE: loop exit
PB: predicated region body
PF: predicated region fallthrough
CT: control target
= control target key end

     0   :  { %s783_s24 = smov 0   ;;  %s866_s0 = inlined_call_operand.vmem [shape: f32[80,12], index: 0, kind: input, shape index: {}]   ;;  %s867_s1 = inlined_call_operand.vmem [shape: bf16[12,32], index: 1, kind: input, shape index: {}]   ;;  %s868_s2 = inlined_call_operand.vmem [shape: f32[1,32], index: 2, kind: input, shape index: {}]   ;;  %s869_s3 = inlined_call_operand.vmem [shape: bf16[32,32], index: 3, kind: input, shape index: {}]   ;;  %s870_s4 = inlined_call_operand.vmem [shape: f32[1,32], index: 4, kind: input, shape index: {}]   ;;  %s871_s5 = inlined_call_operand.vmem [shape: bf16[32,2], index: 5, kind: input, shape index: {}]   ;;  %s872_s6 = inlined_call_operand.vmem [shape: f32[1,2], index: 6, kind: input, shape index: {}]   ;;  %s873_s7 = inlined_call_operand.vmem [shape: f32[80,2], index: 7, kind: output, shape index: {}]  }
   0x1 LB: > { %s630_s25 = sadd.s32 4294967295, %s739_s24   ;;  %p634_p0 = scmp.ge.s32.totalorder %s739_s24, 1  ;;  %s739_s24 = sphi %s783_s24, %s17_s24  }
   0x2   : > { %p238_p1 = scmp.lt.s32.totalorder %s739_s24, 3 }
   0x4   : > { %p239_p2 = pnand %p634_p0, %p238_p1 }
   0x5   : > { %s270_s28 = smul.u32 (!%p239_p2), 5, %s630_s25 }
   0x6   : > { %242 = sbr.rel (%p239_p2) target bundleno = 638 (0x27e), region = 48 }
   0x7   : > { %p271_p3 = scmp.lt.s32.totalorder (!%p239_p2), %s270_s28, 9 }
   0xb   : > { %vm315_vm0 = vcmask 1045504   ;;  %v741_v0 = vmov 0.0   ;;  %v728_v1 = vld [vmem:[%s867_s1] sm:$0x3f]   ;;  %vm742_vm1 = vmmov 0   ;;  %s875_s28 = smov (!%p271_p3, %s270_s28), 9 }
   0xc   : > { %670 = vmatprep.subr.bf16.mxu0 %v741_v0  ;;  %716 = vmatprep.subr.bf16.mxu1 %v741_v0  ;;  %v317_v2 = vsel %vm315_vm0, %v728_v1, 0  ;;  %s635_s29 = sshll.u32 %s875_s28, 3  ;;  %vm305_vm2 = vcmask 97280   ;;  %v729_v8 = vld [vmem:[%s869_s3 + $0x8] sm:$0xff]   ;;  %v730_v12 = vld [vmem:[%s869_s3] sm:$0xff]   ;;  %vm406_vm3 = vcmask 261120  }
   0xd   : > { %672 = vmatprep.mubr.msk.bf16.mxu0 %vm742_vm1, %v741_v0  ;;  %676 = vmatprep.mubr.msk.bf16.mxu1 %vm742_vm1, %v741_v0  ;;  %s274_s9 = scalar_lea.vmem %s866_s0, %s635_s29  ;;  %v637_v13 = vld [vmem:[%s868_s2] ss:$0 sm:$0xff]  ;;  %v731_v39 = vld [vmem:[%s871_s5 + $0x8] sm:$0xff]   ;;  %s280_s27 = scalar_lea.vmem %s873_s7, %s635_s29  ;;  %vm568_vm4 = vcmask 15360  }
   0xe   : > { %671 = vmatpush3.bf16.msra.mxu0 %v317_v2  ;;  %717 = vmatpush3.bf16.msra.mxu1 %v317_v2  ;;  %v283_v3 = vld [vmem:[%s274_s9] sm:$0xff]  ;;  %v284_v4 = vld [vmem:[%s274_s9 + $0x8] sm:$0xff]  ;;  %v285_v5 = vld [vmem:[%s274_s9 + $0x10] sm:$0xff] }
   0xf   : > { %684 = vmatprep.subr.bf16.mxu1 %v741_v0  ;;  %700 = vmatprep.subr.bf16.mxu0 %v741_v0  ;;  %v288_v6 = vpack.c.bf16 %v284_v4, %v283_v3  ;;  %v286_v7 = vld [vmem:[%s274_s9 + $0x18] sm:$0xff]  ;;  %v287_v10 = vld [vmem:[%s274_s9 + $0x20] sm:$0xff] }
  0x10   : > { %v289_v9 = vpack.c.bf16 %v286_v7, %v285_v5  ;;  %v290_v11 = vpack.c.bf16 %v287_v10, %v287_v10  ;;  %v732_v40 = vld [vmem:[%s871_s5] sm:$0xff]  }
  0x11   : > { %673 = vmatmul.mubr.msk.bf16.vlgmr.msra.gmra.mxu0 %vm305_vm2, %v288_v6  ;;  %v642_v41 = vld [vmem:[%s870_s4] ss:$0 sm:$0xff] }
  0x12   : > { %677 = vmatmul.mubr.msk.bf16.vlgmr.msra.gmra.mxu1 %vm305_vm2, %v289_v9  ;;  %704 = vmatprep.mubr.msk.bf16.mxu0 %vm742_vm1, %v741_v0  ;;  %v648_v4 = vld [vmem:[%s872_s6] ss:$0 sm:$0xff] }
  0x13   : > { %680 = vmatprep.mubr.msk.bf16.mxu1 %vm742_vm1, %v741_v0  ;;  %685 = vmatpush3.bf16.msra.mxu1 %v729_v8 }
  0x14   : > { %686 = vmatprep.subr.bf16.mxu1 %v741_v0  ;;  %701 = vmatpush3.bf16.msra.mxu0 %v731_v39 }
  0x15   : > { %702 = vmatprep.subr.bf16.mxu0 %v741_v0 }
  0x17   : > { %687 = vmatpush3.bf16.msra.mxu1 %v730_v12 }
  0x18   : > { %703 = vmatpush3.bf16.msra.mxu0 %v732_v40 }
  0x1a   : > { %681 = vmatmul.mubr.msk.bf16.gmra.mxu1 %vm305_vm2, %v290_v11 }
  0x1b   : > { %688 = vmatprep.mubr.msk.bf16.mxu1 %vm742_vm1, %v741_v0 }
  0xd1   : > { %v353_v14 = vpop.f32.mrf.mxu0 }
  0xd2   : > { %v361_v15 = vpop.f32.mrf.mxu1  ;;  %v354_v17 = vadd.f32 %v637_v13, %v353_v14 }
  0xd3   : > { %v674_v16 = vpop.f32.mrf.mxu0  ;;  %v362_v26 = vadd.f32 %v637_v13, %v361_v15 }
  0xd4   : > { %v678_v18 = vpop.f32.mrf.mxu1  ;;  %v375_v23 = vmax.f32 %v354_v17, 0.0 }
  0xd5   : > { %v356_v19 = vpop.f32.mrf.mxu0  ;;  %v377_v31 = vmax.f32 %v362_v26, 0.0 }
  0xd6   : > { %v357_v20 = vadd.f32 %v637_v13, %v356_v19  ;;  %v364_v21 = vpop.f32.mrf.mxu1 }
  0xd7   : > { %v675_v22 = vpop.f32.mrf.mxu0  ;;  %v365_v28 = vadd.f32 %v637_v13, %v364_v21 }
  0xd8   : > { %v376_v24 = vmax.f32 %v357_v20, 0.0  ;;  %v679_v25 = vpop.f32.mrf.mxu1 }
  0xd9   : > { %v378_v32 = vmax.f32 %v365_v28, 0.0 }
  0xda   : > { %v380_v27 = vpack.c.bf16 %v376_v24, %v375_v23  ;;  %v369_v29 = vpop.f32.mrf.mxu1 }
  0xdb   : > { %v370_v34 = vadd.f32 %v637_v13, %v369_v29  ;;  %v381_v36 = vpack.c.bf16 %v378_v32, %v377_v31 }
  0xdc   : > { %689 = vmatmul.mubr.msk.bf16.vlgmr.msra.gmra.mxu1 %vm406_vm3, %v380_v27  ;;  %v682_v30 = vpop.f32.mrf.mxu1 }
  0xdd   : > { %692 = vmatprep.mubr.msk.bf16.mxu1 %vm742_vm1, %v741_v0  ;;  %v379_v37 = vmax.f32 %v370_v34, 0.0 }
  0xde   : > { %v372_v33 = vpop.f32.mrf.mxu1 }
  0xdf   : > { %v382_v38 = vpack.c.bf16 %v379_v37, %v379_v37 }
  0xe0   : > { %v683_v35 = vpop.f32.mrf.mxu1 }
  0xe4   : > { %693 = vmatmul.mubr.msk.bf16.gmra.mxu1 %vm406_vm3, %v381_v36 }
  0xe5   : > { %696 = vmatprep.mubr.msk.bf16.mxu1 %vm742_vm1, %v741_v0 }
  0xec   : > { %697 = vmatmul.mubr.msk.bf16.gmra.mxu1 %vm406_vm3, %v382_v38 }
 0x19c   : > { %v450_v42 = vpop.f32.mrf.mxu1 }
 0x19d   : > { %v451_v44 = vadd.f32 %v642_v41, %v450_v42 }
 0x19e   : > { %v690_v43 = vpop.f32.mrf.mxu1 }
 0x19f   : > { %v472_v48 = vmax.f32 %v451_v44, 0.0 }
 0x1a0   : > { %v453_v45 = vpop.f32.mrf.mxu1 }
 0x1a1   : > { %v454_v46 = vadd.f32 %v642_v41, %v453_v45 }
 0x1a2   : > { %v691_v47 = vpop.f32.mrf.mxu1 }
 0x1a3   : > { %v473_v49 = vmax.f32 %v454_v46, 0.0 }
 0x1a4   : > { %v458_v50 = vpop.f32.mrf.mxu1 }
 0x1a5   : > { %v477_v51 = vpack.c.bf16 %v473_v49, %v472_v48  ;;  %v459_v53 = vadd.f32 %v642_v41, %v458_v50 }
 0x1a6   : > { %v694_v52 = vpop.f32.mrf.mxu1 }
 0x1a7   : > { %705 = vmatmul.mubr.msk.bf16.vlgmr.msra.gmra.mxu0 %vm406_vm3, %v477_v51  ;;  %v474_v57 = vmax.f32 %v459_v53, 0.0 }
 0x1a8   : > { %v461_v54 = vpop.f32.mrf.mxu1  ;;  %708 = vmatprep.mubr.msk.bf16.mxu0 %vm742_vm1, %v741_v0 }
 0x1a9   : > { %v462_v55 = vadd.f32 %v642_v41, %v461_v54 }
 0x1aa   : > { %v695_v56 = vpop.f32.mrf.mxu1 }
 0x1ab   : > { %v475_v58 = vmax.f32 %v462_v55, 0.0 }
 0x1ac   : > { %v466_v59 = vpop.f32.mrf.mxu1 }
 0x1ad   : > { %v478_v60 = vpack.c.bf16 %v475_v58, %v474_v57  ;;  %v467_v61 = vadd.f32 %v642_v41, %v466_v59 }
 0x1ae   : > { %v698_v62 = vpop.f32.mrf.mxu1 }
 0x1af   : > { %v476_v63 = vmax.f32 %v467_v61, 0.0  ;;  %709 = vmatmul.mubr.msk.bf16.gmra.mxu0 %vm406_vm3, %v478_v60 }
 0x1b0   : > { %v469_v1 = vpop.f32.mrf.mxu1  ;;  %712 = vmatprep.mubr.msk.bf16.mxu0 %vm742_vm1, %v741_v0 }
 0x1b1   : > { %v479_v3 = vpack.c.bf16 %v476_v63, %v476_v63 }
 0x1b2   : > { %v699_v2 = vpop.f32.mrf.mxu1 }
 0x1b7   : > { %713 = vmatmul.mubr.msk.bf16.gmra.mxu0 %vm406_vm3, %v479_v3 }
 0x267   : > { %v546_v5 = vpop.f32.mrf.mxu0 }
 0x268   : > { %v547_v6 = vadd.f32 %v648_v4, %v546_v5 }
 0x269   : > { %v706_v7 = vpop.f32.mrf.mxu0 }
 0x26a   : > { %569 = vst.msk [vmem:[%s280_s27] sm:$0xff] %vm568_vm4, %v547_v6 }
 0x26b   : > { %v549_v0 = vpop.f32.mrf.mxu0 }
 0x26c   : > { %v550_v8 = vadd.f32 %v648_v4, %v549_v0 }
 0x26d   : > { %v707_v9 = vpop.f32.mrf.mxu0 }
 0x26e   : > { %570 = vst.msk [vmem:[%s280_s27 + $0x8] sm:$0xff] %vm568_vm4, %v550_v8 }
 0x26f   : > { %v554_v10 = vpop.f32.mrf.mxu0 }
 0x270   : > { %v555_v11 = vadd.f32 %v648_v4, %v554_v10 }
 0x271   : > { %v710_v12 = vpop.f32.mrf.mxu0 }
 0x272   : > { %571 = vst.msk [vmem:[%s280_s27 + $0x10] sm:$0xff] %vm568_vm4, %v555_v11 }
 0x273   : > { %v557_v13 = vpop.f32.mrf.mxu0 }
 0x274   : > { %v558_v14 = vadd.f32 %v648_v4, %v557_v13 }
 0x275   : > { %v711_v15 = vpop.f32.mrf.mxu0 }
 0x276   : > { %572 = vst.msk [vmem:[%s280_s27 + $0x18] sm:$0xff] %vm568_vm4, %v558_v14 }
 0x277   : > { %v562_v16 = vpop.f32.mrf.mxu0 }
 0x278   : > { %v563_v17 = vadd.f32 %v648_v4, %v562_v16 }
 0x279   : > { %v714_v18 = vpop.f32.mrf.mxu0 }
 0x27a   : > { %573 = vst.msk [vmem:[%s280_s27 + $0x20] sm:$0xff] %vm568_vm4, %v563_v17 }
 0x27b   : > { %v565_v19 = vpop.f32.mrf.mxu0 }
 0x27d   : > { %v715_v20 = vpop.f32.mrf.mxu0 }
 0x27e PF: > { %s17_s24 = sadd.s32 1, %s739_s24  }
 0x27f   : > { %p14_p4 = scmp.ge.s32.totalorder %s17_s24, 4  }
 0x281   :  { %16 = sbr.rel (!%p14_p4) target bundleno = 1 (0x1), region = 78 }

</bundles_post_ra>
